<compile_context>
chip_gen: v6e
topology: v6e:2x2x1
jax: 0.10.0
libtpu: 0.0.40
codegen_flags: <defaults>
</compile_context>

<pallas_src>
import numpy as np
import jax
import jax.numpy as jnp
from jax.experimental import pallas as pl
from jax.experimental.pallas import tpu as pltpu


_VMEM_BUDGET = 20 * 1024 * 1024   # target per-step working set (all gens)
_VMEM_LIMIT = 32 * 1024 * 1024    # scoped VMEM limit handed to Mosaic
_KRON_LIMIT = 6 * 1024 * 1024     # max bytes of the fused Kronecker matrix


def _round_up(x, m):
    return (x + m - 1) // m * m


def _pad_map(p):
    """Padded index -> original index for a left/top reflect pad of 1."""
    return 1 if p == 0 else p - 1


def _haar_row_col_factors(h, w, ho, wo, col_scale=1.0):
    """Separable +/-1 Haar factors with the reflect pad folded in.

    r  : (2*Ho, H)   stacked [row-sum ; row-diff]
    ct : (W, 2*Wo)   stacked [col-sum | col-diff] * col_scale
    """
    r = np.zeros((2 * ho, h), np.float32)
    for i in range(ho):
        r0, r1 = _pad_map(2 * i), _pad_map(2 * i + 1)
        r[i, r0] += 1.0            # row-sum:  xp[2i] + xp[2i+1]
        r[i, r1] += 1.0
        r[ho + i, r0] += 1.0       # row-diff: xp[2i] - xp[2i+1]
        r[ho + i, r1] -= 1.0
    ct = np.zeros((w, 2 * wo), np.float32)
    for j in range(wo):
        c0, c1 = _pad_map(2 * j), _pad_map(2 * j + 1)
        ct[c0, j] += col_scale         # col-sum:  xp[:,2j] + xp[:,2j+1]
        ct[c1, j] += col_scale
        ct[c0, wo + j] -= col_scale    # col-diff: xp[:,2j+1] - xp[:,2j]
        ct[c1, wo + j] += col_scale
    return r, ct


def _haar_kron_matrix(h, w, ho, wo):
    """Fused (H*W, 4*Ho*Wo) matrix; columns quadrant-major [LL|LH|HL|HH],
    row-major inside each quadrant.  Pad, 0.5 magnitude and HH sign folded."""
    r, ct = _haar_row_col_factors(h, w, ho, wo, col_scale=1.0)
    k4 = np.einsum("ui,jv->ijuv", r, ct).astype(np.float32)    # (H,W,2Ho,2Wo)
    scale = np.full((2 * ho, 2 * wo), 0.5, np.float32)
    scale[ho:, wo:] = -0.5                                      # HH quadrant
    k4 = k4 * scale
    q = ho * wo
    k = np.concatenate(
        [
            k4[:, :, :ho, :wo].reshape(h * w, q),   # LL
            k4[:, :, ho:, :wo].reshape(h * w, q),   # LH
            k4[:, :, :ho, wo:].reshape(h * w, q),   # HL
            k4[:, :, ho:, wo:].reshape(h * w, q),   # HH
        ],
        axis=1,
    )
    return jnp.asarray(k)


def _pick_block_batch(nc, row_bytes, const_bytes, max_bsz, sublane_align):
    """Images per grid step under a padding-aware, double-buffered VMEM budget.

    row_bytes  : single-buffered VMEM bytes for one image (lane/sublane padded)
    const_bytes: VMEM bytes of grid-invariant operands (counted double-buffered)
    Returns (bsz, nc_pad).  Either bsz == nc_pad (one full-extent block) or,
    if sublane_align, bsz is a multiple of 8 (the block's sublane dim).
    """
    unit = 8 if sublane_align else 1
    avail = max(_VMEM_BUDGET - 2 * const_bytes, 2 * unit * row_bytes)
    # Tiny problems: one full-extent block (block dim == array dim satisfies
    # the (8,128) rule trivially) -> single grid step, zero per-step overhead.
    if nc <= min(max_bsz, 64) and 2 * _round_up(nc, unit) * row_bytes <= avail:
        return nc, nc
    fit = max(unit, int(avail // (2 * row_bytes)) // unit * unit)
    want = max(unit, _round_up(pl.cdiv(nc, 4), unit))   # >= ~4 steps (megacore)
    cap = max(unit, (max_bsz // unit) * unit)
    bsz = max(unit, min(fit, want, cap))
    return bsz, _round_up(nc, bsz)


# ----------------------------------------------------------------------------
# Kernels
# ----------------------------------------------------------------------------
def _haar_kron_kernel(x_ref, k_ref, o_ref):
    """(bsz, H*W) @ (H*W, 4*Ho*Wo) -> one lane-dense store."""
    x = x_ref[...].astype(jnp.float32)
    o_ref[...] = jnp.dot(
        x, k_ref[...], preferred_element_type=jnp.float32
    ).astype(o_ref.dtype)


def _haar_sep_kernel(x_ref, r_ref, ct_ref, ll_ref, lh_ref, hl_ref, hh_ref):
    """Separable fallback for images too large for the Kronecker matrix."""
    r = r_ref[...]                      # (2Ho, H), +/-1
    ct = ct_ref[...]                    # (W, 2Wo), +/-0.5 (0.5 folded in)
    ho = r_ref.shape[0] // 2
    wo = ct_ref.shape[1] // 2
    for b in range(x_ref.shape[0]):     # bsz is VMEM- and cap-limited (<=16)
        xb = x_ref[b].astype(jnp.float32)                         # (H, W)
        t = jnp.dot(r, xb, preferred_element_type=jnp.float32)    # (2Ho, W)
        y = jnp.dot(t, ct, preferred_element_type=jnp.float32)    # (2Ho, 2Wo)
        ll_ref[b] = y[:ho, :wo].astype(ll_ref.dtype)
        lh_ref[b] = y[ho:, :wo].astype(lh_ref.dtype)
        hl_ref[b] = y[:ho, wo:].astype(hl_ref.dtype)
        hh_ref[b] = (-y[ho:, wo:]).astype(hh_ref.dtype)


# ----------------------------------------------------------------------------
# Drivers
# ----------------------------------------------------------------------------
def _dwt_kron(x, n, c, h, w, ho, wo):
    nc = n * c
    x2 = x.reshape(nc, h * w)                      # free reshape, native dtype
    k = _haar_kron_matrix(h, w, ho, wo)
    in_cols = h * w
    out_cols = 4 * ho * wo
    row_bytes = 4 * (_round_up(in_cols, 128) + _round_up(out_cols, 128))
    const_bytes = 4 * _round_up(in_cols, 8) * _round_up(out_cols, 128)
    bsz, nc_pad = _pick_block_batch(nc, row_bytes, const_bytes,
                                    max_bsz=2048, sublane_align=True)
    if nc_pad != nc:
        x2 = jnp.pad(x2, ((0, nc_pad - nc), (0, 0)))
    grid = nc_pad // bsz

    grid_spec = pltpu.PrefetchScalarGridSpec(
        num_scalar_prefetch=0,
        grid=(grid,),
        in_specs=[
            pl.BlockSpec((bsz, in_cols), lambda i: (i, 0)),
            pl.BlockSpec((in_cols, out_cols), lambda i: (0, 0)),
        ],
        out_specs=pl.BlockSpec((bsz, out_cols), lambda i: (i, 0)),
    )
    y = pl.pallas_call(
        _haar_kron_kernel,
        out_shape=jax.ShapeDtypeStruct((nc_pad, out_cols), jnp.float32),
        grid_spec=grid_spec,
        compiler_params=pltpu.CompilerParams(
            dimension_semantics=("parallel",),
            vmem_limit_bytes=_VMEM_LIMIT,
        ),
    )(x2, k)

    # Quadrant-major columns -> only a free reshape + contiguous slices here.
    y = y[:nc].reshape(n, c, 4, ho, wo)
    return [y[:, :, 0], y[:, :, 1], y[:, :, 2], y[:, :, 3]]


def _dwt_separable(x, n, c, h, w, ho, wo):
    nc = n * c
    x3 = x.reshape(nc, h, w)
    r_np, ct_np = _haar_row_col_factors(h, w, ho, wo, col_scale=0.5)
    r = jnp.asarray(r_np)
    ct = jnp.asarray(ct_np)
    in_bytes = 4 * _round_up(h, 8) * _round_up(w, 128)
    out_bytes = 4 * 4 * _round_up(ho, 8) * _round_up(wo, 128)
    const_bytes = 4 * (_round_up(2 * ho, 8) * _round_up(h, 128)
                       + _round_up(w, 8) * _round_up(2 * wo, 128))
    bsz, nc_pad = _pick_block_batch(nc, in_bytes + out_bytes, const_bytes,
                                    max_bsz=16, sublane_align=False)
    if nc_pad != nc:
        x3 = jnp.pad(x3, ((0, nc_pad - nc), (0, 0), (0, 0)))
    grid = nc_pad // bsz

    out_sds = jax.ShapeDtypeStruct((nc_pad, ho, wo), jnp.float32)
    band_spec = pl.BlockSpec((bsz, ho, wo), lambda i: (i, 0, 0))
    grid_spec = pltpu.PrefetchScalarGridSpec(
        num_scalar_prefetch=0,
        grid=(grid,),
        in_specs=[
            pl.BlockSpec((bsz, h, w), lambda i: (i, 0, 0)),
            pl.BlockSpec((2 * ho, h), lambda i: (0, 0)),
            pl.BlockSpec((w, 2 * wo), lambda i: (0, 0)),
        ],
        out_specs=[band_spec, band_spec, band_spec, band_spec],
    )
    ll, lh, hl, hh = pl.pallas_call(
        _haar_sep_kernel,
        out_shape=(out_sds, out_sds, out_sds, out_sds),
        grid_spec=grid_spec,
        compiler_params=pltpu.CompilerParams(
            dimension_semantics=("parallel",),
            vmem_limit_bytes=_VMEM_LIMIT,
        ),
    )(x3, r, ct)
    osi = (n, c, ho, wo)
    return [ll[:nc].reshape(osi), lh[:nc].reshape(osi),
            hl[:nc].reshape(osi), hh[:nc].reshape(osi)]


def dwt_haar_2d(x, mode="reflect", undecimated=False):
    """x: (N, C, H, W) -> [LL, LH, HL, HH], each (N, C, Ho, Wo) float32."""
    if mode != "reflect":
        # TODO(synk): only mode='reflect' is folded into the factor matrices.
        raise NotImplementedError("only mode='reflect' is supported")
    if undecimated:
        # TODO(synk): undecimated (stride=1) path is not implemented.
        raise NotImplementedError("only the decimated (stride=2) path exists")
    n, c, h, w = x.shape
    assert h >= 2 and w >= 2, "reflect pad requires H >= 2 and W >= 2"
    ho = (h - 1) // 2 + 1          # = ((H+1) - 2)//2 + 1
    wo = (w - 1) // 2 + 1
    if (h * w) * (4 * ho * wo) * 4 <= _KRON_LIMIT:
        return _dwt_kron(x, n, c, h, w, ho, wo)
    return _dwt_separable(x, n, c, h, w, ho, wo)


# ----------------------------------------------------------------------------
# Self-test
# ----------------------------------------------------------------------------
def _reference(x_np):
    """Plain numpy reference mirroring the PyTorch forward (stride=2)."""
    xp = np.pad(x_np, ((0, 0), (0, 0), (1, 0), (1, 0)), mode="reflect")
    _, _, hp, wp = xp.shape
    ho = (hp - 2) // 2 + 1
    wo = (wp - 2) // 2 + 1
    a = xp[:, :, 0:2 * ho:2, 0:2 * wo:2]
    b = xp[:, :, 0:2 * ho:2, 1:2 * wo:2]
    c = xp[:, :, 1:2 * ho:2, 0:2 * wo:2]
    d = xp[:, :, 1:2 * ho:2, 1:2 * wo:2]
    return [0.5 * (a + b + c + d), 0.5 * (a + b - c - d),
            0.5 * (-a + b - c + d), 0.5 * (a - b - c + d)]


if __name__ == "__main__":
    fn = jax.jit(dwt_haar_2d, static_argnames=("mode", "undecimated"))

    # Primary shape implied by the module's typical CNN use.
    x = jax.random.normal(jax.random.PRNGKey(0), (2, 4, 16, 16),
                          dtype=jnp.float32)
    outs = [jax.block_until_ready(o) for o in fn(x)]
    refs = _reference(np.asarray(x))
    for o, ref, name in zip(outs, refs, ["LL", "LH", "HL", "HH"]):
        assert o.shape == (2, 4, 8, 8), (name, o.shape)
        np.testing.assert_allclose(np.asarray(o), ref, rtol=1e-5, atol=1e-5)

    # Odd spatial dims exercise the reflect-pad folding with odd H/W.
    x2 = jax.random.normal(jax.random.PRNGKey(1), (2, 3, 7, 10),
                           dtype=jnp.float32)
    outs2 = [jax.block_until_ready(o) for o in fn(x2)]
    refs2 = _reference(np.asarray(x2))
    for o, ref in zip(outs2, refs2):
        assert o.shape == (2, 3, 4, 5), o.shape
        np.testing.assert_allclose(np.asarray(o), ref, rtol=1e-5, atol=1e-5)

    print("KERNEL_OK")
</pallas_src>

<mosaic_0001>
module attributes {stable_mosaic.version = 11 : i64} {
  func.func @_haar_kron_kernel(%arg0: i32, %arg1: memref<8x256xf32, #tpu.memory_space<vmem>>, %arg2: memref<256x256xf32, #tpu.memory_space<vmem>>, %arg3: memref<8x256xf32, #tpu.memory_space<vmem>>) attributes {dimension_semantics = [#tpu.dimension_semantics<parallel>], iteration_bounds = array<i64: 1>, scalar_prefetch = 0 : i64, scratch_operands = 0 : i64, tpu.core_type = #tpu.core_type<tc>, window_params = [{transform_indices = @transform_0, window_bounds = array<i64: 8, 256>}, {pipeline_mode = #tpu.pipeline_mode<synchronous>, transform_indices = @transform_1, window_bounds = array<i64: 256, 256>}, {transform_indices = @transform_2, window_bounds = array<i64: 8, 256>}]} {
    %c0 = arith.constant 0 : index
    %c0_0 = arith.constant 0 : index
    %0 = vector.load %arg1[%c0, %c0_0] : memref<8x256xf32, #tpu.memory_space<vmem>>, vector<8x256xf32>
    %c0_1 = arith.constant 0 : index
    %c0_2 = arith.constant 0 : index
    %1 = vector.load %arg2[%c0_1, %c0_2] : memref<256x256xf32, #tpu.memory_space<vmem>>, vector<256x256xf32>
    %cst = arith.constant dense<0.000000e+00> : vector<8x256xf32>
    %2 = tpu.matmul %0, %1, %cst {dimension_numbers = #tpu.dot_dimension_numbers<[1], [0], [0], [1], [0, 0, 1, 1], [], []>} : vector<8x256xf32>, vector<256x256xf32>, vector<8x256xf32> -> vector<8x256xf32>
    %c0_3 = arith.constant 0 : index
    %c0_4 = arith.constant 0 : index
    %3 = vector.load %arg3[%c0_3, %c0_4] : memref<8x256xf32, #tpu.memory_space<vmem>>, vector<8x256xf32>
    tpu.vector_store %arg3[%c0_3, %c0_4], %2 {strides = array<i32>} : memref<8x256xf32, #tpu.memory_space<vmem>>, vector<8x256xf32>,
    return
  }
  func.func @transform_0(%arg0: i32) -> (i32, i32) {
    %c0_i32 = arith.constant 0 : i32
    %c0_i32_0 = arith.constant 0 : i32
    return %arg0, %c0_i32 : i32, i32
  }
  func.func @transform_1(%arg0: i32) -> (i32, i32) {
    %c0_i32 = arith.constant 0 : i32
    %c0_i32_0 = arith.constant 0 : i32
    %c0_i32_1 = arith.constant 0 : i32
    return %c0_i32, %c0_i32_0 : i32, i32
  }
  func.func @transform_2(%arg0: i32) -> (i32, i32) {
    %c0_i32 = arith.constant 0 : i32
    %c0_i32_0 = arith.constant 0 : i32
    return %arg0, %c0_i32 : i32, i32
  }
}

</mosaic_0001>

<bundles_post_ra>
// kernel: dwt_haar_2d.1
= control target key start
LH: loop header
LB: loop body
LE: loop exit
PB: predicated region body
PF: predicated region fallthrough
CT: control target
= control target key end

     0   :  { %7 = vsyncpa [#allocation3], 0  ;;  %s194_s9 = smov [#allocation2]   ;;  %s227_s0 = inlined_call_operand.vmem [shape: f32[8,256], index: 0, kind: input, shape index: {}]   ;;  %s228_s1 = inlined_call_operand.hbm [shape: f32[256,256], index: 1, kind: input, shape index: {}]   ;;  %s229_s2 = inlined_call_operand.vmem [shape: f32[8,256], index: 2, kind: output, shape index: {}]  }
   0x1   :  { %s15_s10 = sshll.u32 %s194_s9, 4  ;;  %s16_s10 = int_to_ptr.vmem [resolvable:$true] %s15_s10 }
   0x2   :  { %s180_s11 = scalar_lea.vmem %s16_s10, 8192  ;;  %p185_p1 = scmp.lt.s32.totalorder %s16_s10, %s16_s10 }
   0x3   :  { %p181_p0 = scmp.ne.s32.totalorder %s16_s10, %s180_s11  ;;  %p186_p2 = scmp.lt.s32.totalorder %s180_s11, %s180_s11 }
   0x5   :  { %p187_p3 = por %p186_p2, %p185_p1 }
   0x7   :  { %p188_p4 = pnand %p187_p3, %p181_p0 }
   0x9   :  { %191 = shalt.err (!%p188_p4)
}
   0xa   :  { %s195_s12 = smov 256   ;;  %s196_s13 = smov 16  }
   0xb   :  { %21 = dma.hbm_to_vmem [thread:$0]  %s228_s1, 8192, %s16_s10, [#allocation3], %s195_s12, %s195_s12, %s196_s13  }
   0xc   :  { %192 = dma.done.wait [#allocation3], 8192  }
   0xd   :  { %193 = vsyncadd [#allocation3], 4294959104  ;;  %v58_v0 = vld [vmem:[#allocation2 + $0xf8] sm:$0xff]  ;;  %v57_v1 = vld [vmem:[#allocation2 + $0xf0] sm:$0xff] }
   0xe   :  { %v56_v2 = vld [vmem:[#allocation2 + $0xe8] sm:$0xff]  ;;  %91 = vmatprep.subr.mxu0 %v58_v0  ;;  %v55_v3 = vld [vmem:[#allocation2 + $0xe0] sm:$0xff]  ;;  %v54_v4 = vld [vmem:[#allocation2 + $0xd8] sm:$0xff] }
   0xf   :  { %92 = vmatpush1.msra.mxu0 %v57_v1  ;;  %v53_v5 = vld [vmem:[#allocation2 + $0xd0] sm:$0xff]  ;;  %v52_v6 = vld [vmem:[#allocation2 + $0xc8] sm:$0xff]  ;;  %v51_v7 = vld [vmem:[#allocation2 + $0xc0] sm:$0xff] }
  0x10   :  { %93 = vmatprep.subr.mxu0 %v56_v2  ;;  %v50_v8 = vld [vmem:[#allocation2 + $0xb8] sm:$0xff]  ;;  %v49_v9 = vld [vmem:[#allocation2 + $0xb0] sm:$0xff]  ;;  %v48_v10 = vld [vmem:[#allocation2 + $0xa8] sm:$0xff] }
  0x11   :  { %94 = vmatpush1.msra.mxu0 %v55_v3  ;;  %v47_v11 = vld [vmem:[#allocation2 + $0xa0] sm:$0xff]  ;;  %v46_v12 = vld [vmem:[#allocation2 + $0x98] sm:$0xff]  ;;  %v45_v13 = vld [vmem:[#allocation2 + $0x90] sm:$0xff] }
  0x12   :  { %95 = vmatprep.subr.mxu0 %v54_v4  ;;  %v44_v14 = vld [vmem:[#allocation2 + $0x88] sm:$0xff]  ;;  %v43_v15 = vld [vmem:[#allocation2 + $0x80] sm:$0xff]  ;;  %v42_v16 = vld [vmem:[#allocation2 + $0x78] sm:$0xff] }
  0x13   :  { %96 = vmatpush1.msra.mxu0 %v53_v5  ;;  %v41_v17 = vld [vmem:[#allocation2 + $0x70] sm:$0xff]  ;;  %v40_v18 = vld [vmem:[#allocation2 + $0x68] sm:$0xff]  ;;  %v39_v19 = vld [vmem:[#allocation2 + $0x60] sm:$0xff] }
  0x14   :  { %97 = vmatprep.subr.mxu0 %v52_v6  ;;  %v38_v20 = vld [vmem:[#allocation2 + $0x58] sm:$0xff]  ;;  %v37_v21 = vld [vmem:[#allocation2 + $0x50] sm:$0xff]  ;;  %v36_v22 = vld [vmem:[#allocation2 + $0x48] sm:$0xff] }
  0x15   :  { %98 = vmatpush1.msra.mxu0 %v51_v7  ;;  %v35_v23 = vld [vmem:[#allocation2 + $0x40] sm:$0xff]  ;;  %v26_v24 = vld [vmem:[%s227_s0 + $0x8] sm:$0xff]  ;;  %v34_v25 = vld [vmem:[#allocation2 + $0x38] sm:$0xff] }
  0x16   :  { %99 = vmatprep.subr.mxu0 %v50_v8  ;;  %155 = vmatprep.mubr.f32.mxu0 %v26_v24  ;;  %v33_v26 = vld [vmem:[#allocation2 + $0x30] sm:$0xff]  ;;  %v32_v27 = vld [vmem:[#allocation2 + $0x28] sm:$0xff]  ;;  %v31_v28 = vld [vmem:[#allocation2 + $0x20] sm:$0xff] }
  0x17   :  { %100 = vmatpush1.msra.mxu0 %v49_v9  ;;  %v30_v29 = vld [vmem:[#allocation2 + $0x18] sm:$0xff]  ;;  %v29_v30 = vld [vmem:[#allocation2 + $0x10] sm:$0xff]  ;;  %v28_v31 = vld [vmem:[#allocation2 + $0x8] sm:$0xff] }
  0x18   :  { %101 = vmatprep.subr.mxu0 %v48_v10  ;;  %v27_v32 = vld [vmem:[#allocation2] sm:$0xff]  ;;  %v90_v33 = vld [vmem:[#allocation2 + $0x1f8] sm:$0xff]  ;;  %v89_v34 = vld [vmem:[#allocation2 + $0x1f0] sm:$0xff] }
  0x19   :  { %102 = vmatpush1.msra.mxu0 %v47_v11  ;;  %v88_v35 = vld [vmem:[#allocation2 + $0x1e8] sm:$0xff]  ;;  %v87_v36 = vld [vmem:[#allocation2 + $0x1e0] sm:$0xff]  ;;  %v86_v37 = vld [vmem:[#allocation2 + $0x1d8] sm:$0xff] }
  0x1a   :  { %103 = vmatprep.subr.mxu0 %v46_v12  ;;  %v85_v38 = vld [vmem:[#allocation2 + $0x1d0] sm:$0xff]  ;;  %v84_v39 = vld [vmem:[#allocation2 + $0x1c8] sm:$0xff]  ;;  %v83_v40 = vld [vmem:[#allocation2 + $0x1c0] sm:$0xff] }
  0x1b   :  { %104 = vmatpush1.msra.mxu0 %v45_v13  ;;  %v82_v41 = vld [vmem:[#allocation2 + $0x1b8] sm:$0xff]  ;;  %v81_v42 = vld [vmem:[#allocation2 + $0x1b0] sm:$0xff]  ;;  %v80_v43 = vld [vmem:[#allocation2 + $0x1a8] sm:$0xff] }
  0x1c   :  { %105 = vmatprep.subr.mxu0 %v44_v14  ;;  %v79_v44 = vld [vmem:[#allocation2 + $0x1a0] sm:$0xff]  ;;  %v78_v45 = vld [vmem:[#allocation2 + $0x198] sm:$0xff]  ;;  %v77_v46 = vld [vmem:[#allocation2 + $0x190] sm:$0xff] }
  0x1d   :  { %106 = vmatpush1.msra.mxu0 %v43_v15  ;;  %v76_v47 = vld [vmem:[#allocation2 + $0x188] sm:$0xff]  ;;  %v75_v48 = vld [vmem:[#allocation2 + $0x180] sm:$0xff]  ;;  %v74_v49 = vld [vmem:[#allocation2 + $0x178] sm:$0xff] }
  0x1e   :  { %107 = vmatprep.subr.mxu0 %v42_v16  ;;  %v73_v50 = vld [vmem:[#allocation2 + $0x170] sm:$0xff]  ;;  %v72_v51 = vld [vmem:[#allocation2 + $0x168] sm:$0xff]  ;;  %v71_v52 = vld [vmem:[#allocation2 + $0x160] sm:$0xff] }
  0x1f   :  { %108 = vmatpush1.msra.mxu0 %v41_v17  ;;  %v70_v53 = vld [vmem:[#allocation2 + $0x158] sm:$0xff]  ;;  %v69_v54 = vld [vmem:[#allocation2 + $0x150] sm:$0xff]  ;;  %v68_v55 = vld [vmem:[#allocation2 + $0x148] sm:$0xff] }
  0x20   :  { %109 = vmatprep.subr.mxu0 %v40_v18  ;;  %v67_v56 = vld [vmem:[#allocation2 + $0x140] sm:$0xff]  ;;  %v66_v57 = vld [vmem:[#allocation2 + $0x138] sm:$0xff]  ;;  %v65_v58 = vld [vmem:[#allocation2 + $0x130] sm:$0xff] }
  0x21   :  { %110 = vmatpush1.msra.mxu0 %v39_v19  ;;  %v64_v59 = vld [vmem:[#allocation2 + $0x128] sm:$0xff]  ;;  %v63_v60 = vld [vmem:[#allocation2 + $0x120] sm:$0xff]  ;;  %v62_v61 = vld [vmem:[#allocation2 + $0x118] sm:$0xff] }
  0x22   :  { %111 = vmatprep.subr.mxu0 %v38_v20  ;;  %v61_v62 = vld [vmem:[#allocation2 + $0x110] sm:$0xff]  ;;  %v60_v63 = vld [vmem:[#allocation2 + $0x108] sm:$0xff]  ;;  %v59_v0 = vld [vmem:[#allocation2 + $0x100] sm:$0xff] }
  0x23   :  { %112 = vmatpush1.msra.mxu0 %v37_v21  ;;  %v25_v1 = vld [vmem:[%s227_s0] sm:$0xff] }
  0x24   :  { %113 = vmatprep.subr.mxu0 %v36_v22 }
  0x25   :  { %114 = vmatpush1.msra.mxu0 %v35_v23 }
  0x26   :  { %115 = vmatprep.subr.mxu0 %v34_v25 }
  0x27   :  { %116 = vmatpush1.msra.mxu0 %v33_v26 }
  0x28   :  { %117 = vmatprep.subr.mxu0 %v32_v27 }
  0x29   :  { %118 = vmatpush1.msra.mxu0 %v31_v28 }
  0x2a   :  { %119 = vmatprep.subr.mxu0 %v30_v29 }
  0x2b   :  { %120 = vmatpush1.msra.mxu0 %v29_v30 }
  0x2c   :  { %121 = vmatprep.subr.mxu0 %v28_v31 }
  0x2d   :  { %122 = vmatpush1.msra.mxu0 %v27_v32 }
  0x2e   :  { %123 = vmatprep.subr.mxu0 %v90_v33 }
  0x2f   :  { %124 = vmatpush2.msra.mxu0 %v89_v34 }
  0x30   :  { %125 = vmatprep.subr.mxu0 %v88_v35 }
  0x31   :  { %126 = vmatpush2.msra.mxu0 %v87_v36 }
  0x32   :  { %127 = vmatprep.subr.mxu0 %v86_v37 }
  0x33   :  { %128 = vmatpush2.msra.mxu0 %v85_v38 }
  0x34   :  { %129 = vmatprep.subr.mxu0 %v84_v39 }
  0x35   :  { %130 = vmatpush2.msra.mxu0 %v83_v40 }
  0x36   :  { %131 = vmatprep.subr.mxu0 %v82_v41 }
  0x37   :  { %132 = vmatpush2.msra.mxu0 %v81_v42 }
  0x38   :  { %133 = vmatprep.subr.mxu0 %v80_v43 }
  0x39   :  { %134 = vmatpush2.msra.mxu0 %v79_v44 }
  0x3a   :  { %135 = vmatprep.subr.mxu0 %v78_v45 }
  0x3b   :  { %136 = vmatpush2.msra.mxu0 %v77_v46 }
  0x3c   :  { %137 = vmatprep.subr.mxu0 %v76_v47 }
  0x3d   :  { %138 = vmatpush2.msra.mxu0 %v75_v48 }
  0x3e   :  { %139 = vmatprep.subr.mxu0 %v74_v49 }
  0x3f   :  { %140 = vmatpush2.msra.mxu0 %v73_v50 }
  0x40   :  { %141 = vmatprep.subr.mxu0 %v72_v51 }
  0x41   :  { %142 = vmatpush2.msra.mxu0 %v71_v52 }
  0x42   :  { %143 = vmatprep.subr.mxu0 %v70_v53 }
  0x43   :  { %144 = vmatpush2.msra.mxu0 %v69_v54 }
  0x44   :  { %145 = vmatprep.subr.mxu0 %v68_v55 }
  0x45   :  { %146 = vmatpush2.msra.mxu0 %v67_v56 }
  0x46   :  { %147 = vmatprep.subr.mxu0 %v66_v57 }
  0x47   :  { %148 = vmatpush2.msra.mxu0 %v65_v58 }
  0x48   :  { %149 = vmatprep.subr.mxu0 %v64_v59 }
  0x49   :  { %150 = vmatpush2.msra.mxu0 %v63_v60 }
  0x4a   :  { %151 = vmatprep.subr.mxu0 %v62_v61 }
  0x4b   :  { %152 = vmatpush2.msra.mxu0 %v61_v62 }
  0x4c   :  { %153 = vmatprep.subr.mxu0 %v60_v63 }
  0x4d   :  { %154 = vmatpush2.msra.mxu0 %v59_v0 }
  0x4e   :  { %156 = vmatmul.mubr.f32.vlgmr.msra.gmra.mxu0 %v25_v1 }
 0x10e   :  { %v157_v2 = vpop.f32.mrf.mxu0 }
 0x10f   :  { %162 = vst [vmem:[%s229_s2] sm:$0xff] %v157_v2 }
 0x110   :  { %v159_v3 = vpop.f32.mrf.mxu0 }
 0x111   :  { %163 = vst [vmem:[%s229_s2 + $0x8] sm:$0xff] %v159_v3 }
 0x112   :  { %168 = vsyncpa [#allocation3], 1 }

</bundles_post_ra>
